<compile_context>
chip_gen: v6e
topology: v6e:2x2x1
jax: 0.10.0
libtpu: 0.0.40
codegen_flags: <defaults>
</compile_context>

<pallas_src>
import jax
import jax.numpy as jnp
from jax.experimental import pallas as pl
from jax.experimental.pallas import tpu as pltpu

_LANES = 1024                      # lane-dense slab width (multiple of 128)
_SUBLANE = 8
_MAX_ROWS_PER_BLOCK = 512          # (512, 1024) f32 block = 2 MiB per input
_VMEM_LIMIT = 48 * 1024 * 1024     # plenty for <=20 MiB footprint, v7x-safe


# ---------------------------------------------------------------------------
# Kernels
# ---------------------------------------------------------------------------
def _partial_sum_nw_kernel(p_ref, t_ref, o_ref):
    """Per-block (8, LANES) partial sums of (pred - target)^2 (no weight)."""
    d = p_ref[...].astype(jnp.float32) - t_ref[...].astype(jnp.float32)
    v = d * d
    tm, w = v.shape
    o_ref[...] = v.reshape(tm // _SUBLANE, _SUBLANE, w).sum(axis=0)


def _partial_sum_w_kernel(p_ref, t_ref, w_ref, o_ref):
    """Per-block (8, LANES) partial sums of weight * (pred - target)^2."""
    d = p_ref[...].astype(jnp.float32) - t_ref[...].astype(jnp.float32)
    v = d * d * w_ref[...].astype(jnp.float32)
    tm, w = v.shape
    o_ref[...] = v.reshape(tm // _SUBLANE, _SUBLANE, w).sum(axis=0)


def _elem_nw_kernel(p_ref, t_ref, o_ref):
    """Elementwise (pred - target)^2 (reduction='none', no weight)."""
    d = p_ref[...].astype(jnp.float32) - t_ref[...].astype(jnp.float32)
    o_ref[...] = (d * d).astype(o_ref.dtype)


def _elem_w_kernel(p_ref, t_ref, w_ref, o_ref):
    """Elementwise weight * (pred - target)^2 (reduction='none')."""
    d = p_ref[...].astype(jnp.float32) - t_ref[...].astype(jnp.float32)
    o_ref[...] = (d * d * w_ref[...].astype(jnp.float32)).astype(o_ref.dtype)


# ---------------------------------------------------------------------------
# Glue (plain JAX): layout / flatten / (minimal) zero padding
# ---------------------------------------------------------------------------
def _cdiv(a, b):
    return -(-a // b)


def _choose_tm(rows):
    """rows is a multiple of 8. Pick the biggest tile keeping pad <= 12.5%."""
    if rows <= _MAX_ROWS_PER_BLOCK:
        return rows
    for tm in (512, 256, 128, 64, 32, 16, 8):
        pad = (-rows) % tm
        if pad * 8 <= rows:
            return tm
    return _SUBLANE


def _layout(n):
    """Return (padded_rows, tile_rows, grid) for a flat length n."""
    rows = _cdiv(max(n, 1), _LANES)
    rows = _cdiv(rows, _SUBLANE) * _SUBLANE
    tm = _choose_tm(rows)
    grid = _cdiv(rows, tm)
    return grid * tm, tm, grid


def _flatten_pad(x, rows):
    """Flatten in native dtype; zero-pad the tail only if needed."""
    flat = jnp.asarray(x).reshape(-1)
    pad = rows * _LANES - flat.shape[0]
    if pad:
        flat = jnp.pad(flat, (0, pad))        # zeros: contribute 0 to the sum
    return flat.reshape(rows, _LANES)


def _compiler_params():
    return pltpu.CompilerParams(
        dimension_semantics=("parallel",),
        vmem_limit_bytes=_VMEM_LIMIT,
    )


def _weighted_sq_sum(pred, target, weight):
    """sum(weight * (pred - target)^2) in f32, plus numel of pred."""
    pred = jnp.asarray(pred)
    target = jnp.asarray(target)
    n = pred.size
    rows, tm, grid = _layout(n)

    p2 = _flatten_pad(pred, rows)
    t2 = _flatten_pad(target, rows)
    in_spec = pl.BlockSpec((tm, _LANES), lambda i: (i, 0))
    out_spec = pl.BlockSpec((_SUBLANE, _LANES), lambda i: (i, 0))

    if weight is None:
        kernel = _partial_sum_nw_kernel
        args = (p2, t2)
        in_specs = [in_spec, in_spec]
    else:
        w2 = _flatten_pad(jnp.broadcast_to(jnp.asarray(weight), pred.shape), rows)
        kernel = _partial_sum_w_kernel
        args = (p2, t2, w2)
        in_specs = [in_spec, in_spec, in_spec]

    partials = pl.pallas_call(
        kernel,
        out_shape=jax.ShapeDtypeStruct((grid * _SUBLANE, _LANES), jnp.float32),
        grid=(grid,),
        in_specs=in_specs,
        out_specs=out_spec,
        compiler_params=_compiler_params(),
    )(*args)
    return jnp.sum(partials), n


def _weighted_sq_elem(pred, target, weight):
    """Elementwise weight * (pred - target)^2 (reduction='none')."""
    pred = jnp.asarray(pred)
    target = jnp.asarray(target)
    n = pred.size

    out_dtype = jnp.result_type(pred.dtype, target.dtype)
    if weight is not None:
        out_dtype = jnp.result_type(out_dtype, jnp.float32)
    if not jnp.issubdtype(out_dtype, jnp.floating):
        out_dtype = jnp.float32

    rows, tm, grid = _layout(n)
    p2 = _flatten_pad(pred, rows)
    t2 = _flatten_pad(target, rows)
    spec = pl.BlockSpec((tm, _LANES), lambda i: (i, 0))

    if weight is None:
        kernel = _elem_nw_kernel
        args = (p2, t2)
        in_specs = [spec, spec]
    else:
        w2 = _flatten_pad(jnp.broadcast_to(jnp.asarray(weight), pred.shape), rows)
        kernel = _elem_w_kernel
        args = (p2, t2, w2)
        in_specs = [spec, spec, spec]

    out = pl.pallas_call(
        kernel,
        out_shape=jax.ShapeDtypeStruct((rows, _LANES), out_dtype),
        grid=(grid,),
        in_specs=in_specs,
        out_specs=spec,
        compiler_params=_compiler_params(),
    )(*args)

    if rows * _LANES == n:           # no padding was needed: reshape only
        return out.reshape(pred.shape)
    return out.reshape(-1)[:n].reshape(pred.shape)


# ---------------------------------------------------------------------------
# Module equivalent
# ---------------------------------------------------------------------------
class KDMSELoss:
    """JAX/Pallas port of mmdet KDMSELoss (no learnable parameters)."""

    def __init__(self, reduction='mean', loss_weight=1.0):
        self.reduction = reduction
        self.loss_weight = loss_weight

    def __call__(self, pred, target, weight=None, avg_factor=None):
        red = self.reduction
        if red == 'none':
            if avg_factor is not None:
                raise ValueError("avg_factor cannot be used with reduction='none'")
            return self.loss_weight * _weighted_sq_elem(pred, target, weight)

        total, n = _weighted_sq_sum(pred, target, weight)
        if avg_factor is None:
            if red == 'mean':
                return self.loss_weight * total / jnp.float32(n)
            if red == 'sum':
                return self.loss_weight * total
            raise ValueError(f"unsupported reduction: {red}")
        # avg_factor given: only valid with 'mean' (mmdet semantics)
        if red != 'mean':
            raise ValueError("avg_factor can not be used with reduction='sum'")
        return self.loss_weight * total / jnp.float32(avg_factor)


# ---------------------------------------------------------------------------
# Demo / self-check
# ---------------------------------------------------------------------------
if __name__ == "__main__":
    key = jax.random.PRNGKey(0)
    k1, k2, k3 = jax.random.split(key, 3)

    # NCHW, as the PyTorch module would receive (student/teacher feature maps)
    pred = jax.random.normal(k1, (2, 4, 16, 16), dtype=jnp.float32)
    target = jax.random.normal(k2, (2, 4, 16, 16), dtype=jnp.float32)
    weight = jax.random.uniform(k3, (2, 4, 16, 16), dtype=jnp.float32)

    loss_mod = KDMSELoss(reduction='mean', loss_weight=1.0)

    # mean, no weight (2-input kernel path)
    out = jax.block_until_ready(loss_mod(pred, target))
    ref = jnp.mean((pred - target) ** 2)
    assert jnp.allclose(out, ref, rtol=1e-5, atol=1e-6), (out, ref)

    # mean with weight + avg_factor (3-input kernel path)
    out_w = jax.block_until_ready(loss_mod(pred, target, weight, avg_factor=100.0))
    ref_w = jnp.sum(((pred - target) ** 2) * weight) / 100.0
    assert jnp.allclose(out_w, ref_w, rtol=1e-5, atol=1e-6), (out_w, ref_w)

    # sum reduction
    loss_sum = KDMSELoss(reduction='sum', loss_weight=1.0)
    out_s = jax.block_until_ready(loss_sum(pred, target))
    ref_s = jnp.sum((pred - target) ** 2)
    assert jnp.allclose(out_s, ref_s, rtol=1e-5, atol=1e-5), (out_s, ref_s)

    # reduction='none' with weight
    loss_none = KDMSELoss(reduction='none', loss_weight=2.0)
    out_n = jax.block_until_ready(loss_none(pred, target, weight))
    ref_n = 2.0 * ((pred - target) ** 2) * weight
    assert out_n.shape == pred.shape
    assert jnp.allclose(out_n, ref_n, rtol=1e-5, atol=1e-6)

    # native-dtype path: bf16 inputs, no wrapper-side f32 cast
    pred_b = pred.astype(jnp.bfloat16)
    target_b = target.astype(jnp.bfloat16)
    out_b = jax.block_until_ready(loss_mod(pred_b, target_b))
    ref_b = jnp.mean((pred_b.astype(jnp.float32) - target_b.astype(jnp.float32)) ** 2)
    assert jnp.allclose(out_b, ref_b, rtol=1e-4, atol=1e-5), (out_b, ref_b)

    print("KERNEL_OK")
</pallas_src>

<mosaic_0001>
module attributes {stable_mosaic.version = 11 : i64} {
  func.func @_partial_sum_nw_kernel(%arg0: i32, %arg1: memref<8x1024xf32, #tpu.memory_space<vmem>>, %arg2: memref<8x1024xf32, #tpu.memory_space<vmem>>, %arg3: memref<8x1024xf32, #tpu.memory_space<vmem>>) attributes {dimension_semantics = [#tpu.dimension_semantics<parallel>], iteration_bounds = array<i64: 1>, scalar_prefetch = 0 : i64, scratch_operands = 0 : i64, tpu.core_type = #tpu.core_type<tc>, window_params = [{transform_indices = @transform_0, window_bounds = array<i64: 8, 1024>}, {transform_indices = @transform_1, window_bounds = array<i64: 8, 1024>}, {transform_indices = @transform_2, window_bounds = array<i64: 8, 1024>}]} {
    %c0 = arith.constant 0 : index
    %c0_0 = arith.constant 0 : index
    %0 = vector.load %arg1[%c0, %c0_0] : memref<8x1024xf32, #tpu.memory_space<vmem>>, vector<8x1024xf32>
    %c0_1 = arith.constant 0 : index
    %c0_2 = arith.constant 0 : index
    %1 = vector.load %arg2[%c0_1, %c0_2] : memref<8x1024xf32, #tpu.memory_space<vmem>>, vector<8x1024xf32>
    %2 = arith.subf %0, %1 : vector<8x1024xf32>
    %3 = arith.mulf %2, %2 : vector<8x1024xf32>
    %4 = vector.shape_cast %3 : vector<8x1024xf32> to vector<1x8x1024xf32>
    %cst = arith.constant dense<0.000000e+00> : vector<8x1024xf32>
    %5 = vector.multi_reduction <add>, %4, %cst [0] : vector<1x8x1024xf32> to vector<8x1024xf32>
    %c0_3 = arith.constant 0 : index
    %c0_4 = arith.constant 0 : index
    %6 = vector.load %arg3[%c0_3, %c0_4] : memref<8x1024xf32, #tpu.memory_space<vmem>>, vector<8x1024xf32>
    tpu.vector_store %arg3[%c0_3, %c0_4], %5 {strides = array<i32>} : memref<8x1024xf32, #tpu.memory_space<vmem>>, vector<8x1024xf32>,
    return
  }
  func.func @transform_0(%arg0: i32) -> (i32, i32) {
    %c0_i32 = arith.constant 0 : i32
    %c0_i32_0 = arith.constant 0 : i32
    return %arg0, %c0_i32 : i32, i32
  }
  func.func @transform_1(%arg0: i32) -> (i32, i32) {
    %c0_i32 = arith.constant 0 : i32
    %c0_i32_0 = arith.constant 0 : i32
    return %arg0, %c0_i32 : i32, i32
  }
  func.func @transform_2(%arg0: i32) -> (i32, i32) {
    %c0_i32 = arith.constant 0 : i32
    %c0_i32_0 = arith.constant 0 : i32
    return %arg0, %c0_i32 : i32, i32
  }
}

</mosaic_0001>

<bundles_post_ra>
// kernel: tpu_custom_call.1
= control target key start
LH: loop header
LB: loop body
LE: loop exit
PB: predicated region body
PF: predicated region fallthrough
CT: control target
= control target key end

     0   :  { %7 = vsyncpa [#allocation3], 0  ;;  %s196_s0 = inlined_call_operand.hbm [shape: f32[8,1024], index: 0, kind: input, shape index: {}]   ;;  %s197_s1 = inlined_call_operand.hbm [shape: f32[8,1024], index: 1, kind: input, shape index: {}]   ;;  %s198_s2 = inlined_call_operand.hbm [shape: f32[8,1024], index: 2, kind: output, shape index: {}]  }
   0x1   :  { %8 = vsyncpa [#allocation6], 0 }
   0x2   :  { %9 = vsyncpa [#allocation4], 0  ;;  %s169_s9 = smov [#allocation2]   ;;  %s170_s11 = smov [#allocation5]  }
   0x3   :  { %s16_s10 = sshll.u32 %s169_s9, 4  ;;  %s26_s12 = sshll.u32 %s170_s11, 4  ;;  %s17_s10 = int_to_ptr.vmem [resolvable:$true] %s16_s10  ;;  %s27_s12 = int_to_ptr.vmem [resolvable:$true] %s26_s12 }
   0x4   :  { %s111_s13 = scalar_lea.vmem %s17_s10, 1024  ;;  %p116_p1 = scmp.lt.s32.totalorder %s17_s10, %s17_s10 }
   0x5   :  { %p112_p0 = scmp.ne.s32.totalorder %s17_s10, %s111_s13  ;;  %p117_p2 = scmp.lt.s32.totalorder %s111_s13, %s111_s13 }
   0x7   :  { %p118_p3 = por %p117_p2, %p116_p1 }
   0x9   :  { %p119_p4 = pnand %p118_p3, %p112_p0 }
   0xb   :  { %122 = shalt.err (!%p119_p4)
}
   0xc   :  { %19 = dma.hbm_to_vmem [thread:$0]  %s196_s0, 1024, %s17_s10, [#allocation3]  }
   0xd   :  { %s131_s16 = scalar_lea.vmem %s27_s12, 1024  ;;  %p136_p6 = scmp.lt.s32.totalorder %s27_s12, %s27_s12 }
   0xe   :  { %p132_p5 = scmp.ne.s32.totalorder %s27_s12, %s131_s16  ;;  %p137_p7 = scmp.lt.s32.totalorder %s131_s16, %s131_s16 }
  0x10   :  { %p138_p8 = por %p137_p7, %p136_p6 }
  0x12   :  { %p139_p9 = pnand %p138_p8, %p132_p5 }
  0x14   :  { %142 = shalt.err (!%p139_p9)
}
  0x15   :  { %29 = dma.hbm_to_vmem [thread:$0]  %s197_s1, 1024, %s27_s12, [#allocation6]  }
  0x16   :  { %163 = dma.done.wait [#allocation3], 1024  }
  0x17   :  { %164 = vsyncadd [#allocation3], 4294966272 }
  0x18   :  { %165 = dma.done.wait [#allocation6], 1024  }
  0x19   :  { %166 = vsyncadd [#allocation6], 4294966272  ;;  %v36_v0 = vld [vmem:[#allocation2] sm:$0xff]  ;;  %v37_v2 = vld [vmem:[#allocation2 + $0x8] sm:$0xff]  ;;  %s171_s0 = smov [#allocation7]  }
  0x1a   :  { %v44_v1 = vld [vmem:[#allocation5] sm:$0xff]  ;;  %v45_v4 = vld [vmem:[#allocation5 + $0x8] sm:$0xff]  ;;  %v38_v5 = vld [vmem:[#allocation2 + $0x10] sm:$0xff]  ;;  %s90_s1 = sshll.u32 %s171_s0, 4  ;;  %s91_s1 = int_to_ptr.vmem [resolvable:$true] %s90_s1 }
  0x1b   :  { %v52_v3 = vsub.f32 %v36_v0, %v44_v1  ;;  %v46_v6 = vld [vmem:[#allocation5 + $0x10] sm:$0xff]  ;;  %v53_v7 = vsub.f32 %v37_v2, %v45_v4  ;;  %v39_v9 = vld [vmem:[#allocation2 + $0x18] sm:$0xff]  ;;  %v40_v11 = vld [vmem:[#allocation2 + $0x20] sm:$0xff]  ;;  %s143_s19 = scalar_lea.vmem %s91_s1, 1024  ;;  %p148_p11 = scmp.lt.s32.totalorder %s91_s1, %s91_s1 }
  0x1c   :  { %v54_v8 = vsub.f32 %v38_v5, %v46_v6  ;;  %v47_v10 = vld [vmem:[#allocation5 + $0x18] sm:$0xff]  ;;  %v48_v14 = vld [vmem:[#allocation5 + $0x20] sm:$0xff]  ;;  %v41_v15 = vld [vmem:[#allocation2 + $0x28] sm:$0xff]  ;;  %p144_p10 = scmp.ne.s32.totalorder %s91_s1, %s143_s19  ;;  %p149_p12 = scmp.lt.s32.totalorder %s143_s19, %s143_s19 }
  0x1d   :  { %v60_v12 = vmul.f32 %v52_v3, %v52_v3  ;;  %v55_v13 = vsub.f32 %v39_v9, %v47_v10  ;;  %v49_v16 = vld [vmem:[#allocation5 + $0x28] sm:$0xff]  ;;  %v61_v17 = vmul.f32 %v53_v7, %v53_v7  ;;  %v56_v19 = vsub.f32 %v40_v11, %v48_v14  ;;  %v42_v21 = vld [vmem:[#allocation2 + $0x30] sm:$0xff]  ;;  %v43_v23 = vld [vmem:[#allocation2 + $0x38] sm:$0xff] }
  0x1e   :  { %v62_v18 = vmul.f32 %v54_v8, %v54_v8  ;;  %v57_v20 = vsub.f32 %v41_v15, %v49_v16  ;;  %v50_v22 = vld [vmem:[#allocation5 + $0x30] sm:$0xff]  ;;  %v51_v26 = vld [vmem:[#allocation5 + $0x38] sm:$0xff]  ;;  %p150_p13 = por %p149_p12, %p148_p11 }
  0x1f   :  { %76 = vst [vmem:[#allocation7] sm:$0xff] %v60_v12  ;;  %v63_v24 = vmul.f32 %v55_v13, %v55_v13  ;;  %v58_v25 = vsub.f32 %v42_v21, %v50_v22  ;;  %77 = vst [vmem:[#allocation7 + $0x8] sm:$0xff] %v61_v17  ;;  %v64_v27 = vmul.f32 %v56_v19, %v56_v19 }
  0x20   :  { %78 = vst [vmem:[#allocation7 + $0x10] sm:$0xff] %v62_v18  ;;  %v65_v28 = vmul.f32 %v57_v20, %v57_v20  ;;  %v59_v29 = vsub.f32 %v43_v23, %v51_v26  ;;  %p151_p0 = pnand %p150_p13, %p144_p10 }
  0x21   :  { %79 = vst [vmem:[#allocation7 + $0x18] sm:$0xff] %v63_v24  ;;  %v66_v30 = vmul.f32 %v58_v25, %v58_v25  ;;  %80 = vst [vmem:[#allocation7 + $0x20] sm:$0xff] %v64_v27 }
  0x22   :  { %81 = vst [vmem:[#allocation7 + $0x28] sm:$0xff] %v65_v28  ;;  %v67_v31 = vmul.f32 %v59_v29, %v59_v29 }
  0x23   :  { %82 = vst [vmem:[#allocation7 + $0x30] sm:$0xff] %v66_v30 }
  0x24   :  { %83 = vst [vmem:[#allocation7 + $0x38] sm:$0xff] %v67_v31 }
  0x25   :  { %154 = shalt.err (!%p151_p0)
}
  0x26   :  { %93 = dma.vmem_to_hbm [thread:$0]  %s91_s1, 1024, %s198_s2, [#allocation4]  }
  0x27   :  { %167 = dma.done.wait [#allocation4], 1024  }
  0x28   :  { %168 = vsyncadd [#allocation4], 4294966272 }
  0x29   :  { %97 = vsyncpa [#allocation3], 1 }
  0x2a   :  { %98 = vsyncpa [#allocation6], 1 }
  0x2b   :  { %99 = vsyncpa [#allocation4], 1 }

</bundles_post_ra>
